<compile_context>
chip_gen: v7x
topology: tpu7x:2x2x1
jax: 0.10.0
libtpu: 0.0.40
codegen_flags: <defaults>
</compile_context>

<pallas_src>
import math

import jax
import jax.numpy as jnp
from jax.experimental import pallas as pl
from jax.experimental.pallas import tpu as pltpu

N_EMBD = 6      # d_model (spec)
SEQ_LEN = 4     # max_len (spec)

_SUBLANE = 8
_MAX_BLOCK_ROWS = 1024
# ~4 MiB per output block; the pipeline double-buffers it -> <=8 MiB of VMEM, safely inside
# the scoped default on every generation (v5e 16 MiB, v6e/v7x 32 MiB).
_BLOCK_BYTE_BUDGET = 4 << 20


def _round_up(x: int, m: int) -> int:
    return ((x + m - 1) // m) * m


def _tensorcores_per_chip() -> int:
    """2 TensorCores per chip on v7x; v5e/v6e are single-TC (grid is a serial loop there)."""
    try:
        kind = jax.devices()[0].device_kind.lower()
    except Exception:
        return 1
    return 2 if ("v7" in kind or "7x" in kind) else 1


def _choose_block_rows(padded_len: int, d_model: int, itemsize: int) -> int:
    rows_by_bytes = _BLOCK_BYTE_BUDGET // max(1, d_model * itemsize)
    rows = min(_MAX_BLOCK_ROWS, rows_by_bytes, padded_len)
    rows = max(_SUBLANE, (rows // _SUBLANE) * _SUBLANE)
    # v7x: make sure there are >=2 seq tiles (when the table is big enough) so
    # dimension_semantics=("parallel",) actually feeds both TensorCores.
    # v5e/v6e: keep tiles as big and as few as possible (per-step overhead ~0.35 us).
    if _tensorcores_per_chip() >= 2:
        while pl.cdiv(padded_len, rows) < 2 and rows > _SUBLANE:
            rows = max(_SUBLANE, ((rows // 2) // _SUBLANE) * _SUBLANE)
    return rows


def _pe_kernel(inv_freq_ref, phase_ref, o_ref):
    """Write one (block_rows, d_model) seq-tile of the PE table.

    pe[pos, j] = sin(pos * inv_freq[j] + phase[j])  with inv_freq/phase precomputed (1, d_model):
      even j -> phase 0      -> sin(pos * div)
      odd  j -> phase pi/2   -> cos(pos * div)
    which matches pe[:, 0::2] = sin, pe[:, 1::2] = cos for even d_model.
    """
    rows = o_ref.shape[0]
    row0 = pl.program_id(0) * rows
    # Global position for this seq tile (int32 iota -> f32 cast; positions fit f32 exactly
    # for any realistic max_len).
    pos = (jax.lax.broadcasted_iota(jnp.int32, (rows, 1), 0) + row0).astype(jnp.float32)
    angle = pos * inv_freq_ref[...] + phase_ref[...]        # (rows, d_model) via broadcast
    o_ref[...] = jnp.sin(angle).astype(o_ref.dtype)         # single transcendental per element


def positional_encoding(max_len: int = SEQ_LEN,
                        d_model: int = N_EMBD,
                        out_dtype=jnp.float32,
                        block_rows: int | None = None) -> jax.Array:
    """Return the [max_len, d_model] sinusoidal PE table computed in a Pallas TPU kernel."""
    if d_model % 2 != 0:
        raise ValueError("d_model must be even (PyTorch pe[:,1::2]=cos layout requires it).")
    itemsize = jnp.dtype(out_dtype).itemsize

    if block_rows is None:
        block_rows = _choose_block_rows(_round_up(max_len, _SUBLANE), d_model, itemsize)
    elif block_rows != max_len and block_rows % _SUBLANE != 0:
        raise ValueError("explicit block_rows must be a multiple of 8 (or equal max_len).")

    num_blocks = pl.cdiv(max_len, block_rows)
    padded_len = num_blocks * block_rows            # pad rows, slice back in the wrapper

    # Column-invariant setup hoisted out of the kernel body (computed once, not per grid step).
    col = jnp.arange(d_model, dtype=jnp.int32)
    k = (col & ~1).astype(jnp.float32)                                   # even freq index per pair
    inv_freq = jnp.exp(k * (-math.log(10000.0) / d_model)).reshape(1, d_model)
    phase = ((col & 1).astype(jnp.float32) * (math.pi / 2.0)).reshape(1, d_model)

    pe = pl.pallas_call(
        _pe_kernel,
        out_shape=jax.ShapeDtypeStruct((padded_len, d_model), out_dtype),
        grid=(num_blocks,),
        in_specs=[
            # Constant block index -> stays VMEM-resident across the whole grid.
            pl.BlockSpec((1, d_model), lambda i: (0, 0)),
            pl.BlockSpec((1, d_model), lambda i: (0, 0)),
        ],
        out_specs=pl.BlockSpec((block_rows, d_model), lambda i: (i, 0)),
        compiler_params=pltpu.CompilerParams(
            dimension_semantics=("parallel",),      # v7x: each TC takes half the seq tiles
        ),
    )(inv_freq, phase)

    return pe if padded_len == max_len else pe[:max_len]


def _reference(max_len: int, d_model: int) -> jnp.ndarray:
    """Pure-JAX reference mirroring the PyTorch __init__ exactly."""
    position = jnp.arange(max_len, dtype=jnp.float32)[:, None]
    div_term = jnp.exp(jnp.arange(0, d_model, 2, dtype=jnp.float32)
                       * (-math.log(10000.0) / d_model))
    pe = jnp.zeros((max_len, d_model), dtype=jnp.float32)
    pe = pe.at[:, 0::2].set(jnp.sin(position * div_term))
    pe = pe.at[:, 1::2].set(jnp.cos(position * div_term))
    return pe


if __name__ == "__main__":
    # forward() takes no tensor argument (it returns the registered buffer);
    # build a deterministic dummy "input" for form only.
    key = jax.random.PRNGKey(0)
    x_dummy = jax.random.normal(key, (SEQ_LEN, N_EMBD), dtype=jnp.float32)  # unused by forward()

    # 1) Spec-sized table (4, 6): rows padded to 8 inside the kernel, sliced back here.
    pe = jax.block_until_ready(positional_encoding(SEQ_LEN, N_EMBD))
    ref = _reference(SEQ_LEN, N_EMBD)
    assert pe.shape == (SEQ_LEN, N_EMBD)
    assert pe.dtype == jnp.float32
    assert jnp.allclose(pe, ref, atol=1e-5, rtol=1e-5), "mismatch vs reference (4,6)"

    # 2) Lane-dense path with a non-multiple-of-8 max_len (auto tile policy, pad + slice).
    pe2 = jax.block_until_ready(positional_encoding(100, 128))
    assert pe2.shape == (100, 128)
    assert jnp.allclose(pe2, _reference(100, 128), atol=1e-4, rtol=1e-4), "mismatch (100,128)"

    # 3) Explicit multi-tile grid (4 seq tiles of 16 rows).
    pe3 = jax.block_until_ready(positional_encoding(64, 128, block_rows=16))
    assert jnp.allclose(pe3, _reference(64, 128), atol=1e-4, rtol=1e-4), "mismatch (64,128)"

    # 4) bf16 output (compute stays f32, cast only at the store).
    pe4 = jax.block_until_ready(positional_encoding(64, 128, out_dtype=jnp.bfloat16))
    assert pe4.dtype == jnp.bfloat16
    assert jnp.allclose(pe4.astype(jnp.float32), _reference(64, 128),
                        atol=2e-2, rtol=2e-2), "mismatch bf16 (64,128)"

    print("KERNEL_OK")
</pallas_src>

<mosaic_0001>
module attributes {stable_mosaic.version = 11 : i64} {
  func.func @_pe_kernel(%arg0: i32, %arg1: memref<1x6xf32, #tpu.memory_space<vmem>>, %arg2: memref<1x6xf32, #tpu.memory_space<vmem>>, %arg3: memref<8x6xf32, #tpu.memory_space<vmem>>) attributes {dimension_semantics = [#tpu.dimension_semantics<parallel>], iteration_bounds = array<i64: 1>, scalar_prefetch = 0 : i64, scratch_operands = 0 : i64, tpu.core_type = #tpu.core_type<tc>, window_params = [{pipeline_mode = #tpu.pipeline_mode<synchronous>, transform_indices = @transform_0, window_bounds = array<i64: 1, 6>}, {pipeline_mode = #tpu.pipeline_mode<synchronous>, transform_indices = @transform_1, window_bounds = array<i64: 1, 6>}, {transform_indices = @transform_2, window_bounds = array<i64: 8, 6>}]} {
    %c8_i32 = arith.constant 8 : i32
    %0 = arith.muli %arg0, %c8_i32 : i32
    %1 = tpu.iota {dimensions = array<i32: 0>} : vector<8x1xi32>
    %2 = vector.broadcast %0 : i32 to vector<8x1xi32>
    %3 = arith.addi %1, %2 : vector<8x1xi32>
    %4 = arith.sitofp %3 : vector<8x1xi32> to vector<8x1xf32>
    %c0 = arith.constant 0 : index
    %c0_0 = arith.constant 0 : index
    %5 = vector.load %arg1[%c0, %c0_0] : memref<1x6xf32, #tpu.memory_space<vmem>>, vector<1x6xf32>
    %6 = vector.broadcast %4 : vector<8x1xf32> to vector<8x6xf32>
    %7 = vector.broadcast %5 : vector<1x6xf32> to vector<8x6xf32>
    %8 = arith.mulf %6, %7 : vector<8x6xf32>
    %c0_1 = arith.constant 0 : index
    %c0_2 = arith.constant 0 : index
    %9 = vector.load %arg2[%c0_1, %c0_2] : memref<1x6xf32, #tpu.memory_space<vmem>>, vector<1x6xf32>
    %10 = vector.broadcast %9 : vector<1x6xf32> to vector<8x6xf32>
    %11 = arith.addf %8, %10 : vector<8x6xf32>
    %12 = math.sin %11 : vector<8x6xf32>
    %c0_3 = arith.constant 0 : index
    %c0_4 = arith.constant 0 : index
    %13 = vector.load %arg3[%c0_3, %c0_4] : memref<8x6xf32, #tpu.memory_space<vmem>>, vector<8x6xf32>
    tpu.vector_store %arg3[%c0_3, %c0_4], %12 {strides = array<i32>} : memref<8x6xf32, #tpu.memory_space<vmem>>, vector<8x6xf32>,
    return
  }
  func.func @transform_0(%arg0: i32) -> (i32, i32) {
    %c0_i32 = arith.constant 0 : i32
    %c0_i32_0 = arith.constant 0 : i32
    %c0_i32_1 = arith.constant 0 : i32
    return %c0_i32, %c0_i32_0 : i32, i32
  }
  func.func @transform_1(%arg0: i32) -> (i32, i32) {
    %c0_i32 = arith.constant 0 : i32
    %c0_i32_0 = arith.constant 0 : i32
    %c0_i32_1 = arith.constant 0 : i32
    return %c0_i32, %c0_i32_0 : i32, i32
  }
  func.func @transform_2(%arg0: i32) -> (i32, i32) {
    %c0_i32 = arith.constant 0 : i32
    %c0_i32_0 = arith.constant 0 : i32
    return %arg0, %c0_i32 : i32, i32
  }
}

</mosaic_0001>

<bundles_post_ra>
// kernel: tpu_custom_call.1
= control target key start
LH: loop header
LB: loop body
LE: loop exit
PB: predicated region body
PF: predicated region fallthrough
CT: control target
= control target key end

     0   :  { %7 = vsyncpa [#allocation3], 0  ;;  %s308_s0 = inlined_call_operand.hbm [shape: f32[1,6], index: 0, kind: input, shape index: {}]   ;;  %s309_s1 = inlined_call_operand.vmem [shape: f32[1,6], index: 1, kind: input, shape index: {}]   ;;  %s310_s2 = inlined_call_operand.hbm [shape: f32[8,6], index: 2, kind: output, shape index: {}]  }
   0x1   :  { %8 = vsyncpa [#allocation4], 0  ;;  %s237_s9 = smov [#allocation2]   ;;  %s189_s13 = scalar_lea.hbm %s308_s0, 16 }
   0x2   :  { %s15_s10 = sshll.u32 %s237_s9, 4  ;;  %p190_p0 = scmp.ne.s32.totalorder %s308_s0, %s189_s13  ;;  %s16_s10 = int_to_ptr.vmem [resolvable:$true] %s15_s10 }
   0x3   :  { %p193_p1 = scmp.lt.u32.totalorder %s189_s13, %s308_s0 }
   0x5   :  { %p195_p2 = pnand %p193_p1, %p190_p0 }
   0x7   :  { %198 = shalt.err (!%p195_p2)
}
   0x8   :  { %s199_s18 = scalar_lea.vmem %s16_s10, 16  ;;  %s203_s19 = scalar_lea.vmem %s16_s10, 32 }
   0x9   :  { %p200_p3 = scmp.ne.s32.totalorder %s16_s10, %s199_s18  ;;  %p204_p4 = scmp.lt.s32.totalorder %s16_s10, %s16_s10 }
   0xa   :  { %p205_p5 = scmp.lt.s32.totalorder %s203_s19, %s199_s18 }
   0xc   :  { %p206_p6 = por %p205_p5, %p204_p4 }
   0xe   :  { %p207_p7 = pnand %p206_p6, %p200_p3 }
  0x10   :  { %210 = shalt.err (!%p207_p7)
}
  0x11   :  { %18 = dma.hbm_to_vmem [thread:$0]  %s308_s0, 16, %s16_s10, [#allocation3]  }
  0x12   :  { %233 = dma.done.wait [#allocation3], 16  }
  0x13   :  { %234 = vsyncadd [#allocation3], 4294967280  ;;  %v25_v0 = vlaneseq  ;;  %v167_v3 = vld [vmem:[#allocation2] ss:$0 sm:$0xff]  ;;  %v238_v18 = vmov 683565275  }
  0x14   :  { %v168_v4 = vld [vmem:[%s309_s1] ss:$0 sm:$0xff]  ;;  %v239_v20 = vmov 2475754826   ;;  %v240_v22 = vmov 2131351028  }
  0x15   :  { %v26_v1 = vshrl.u32 %v25_v0, 7  ;;  %v241_v24 = vmov 2102212464   ;;  %v242_v26 = vmov 920167782   ;;  %s244_s0 = smov [#allocation5]  }
  0x16   :  { %v243_v33 = vmov 1326507024   ;;  %s158_s1 = sshll.u32 %s244_s0, 4  ;;  %vm150_vm13 = vcmask 48128   ;;  %s159_s1 = int_to_ptr.vmem [resolvable:$true] %s158_s1 }
  0x17   :  { %v29_v2 = vcvt.s32.f32 %v26_v1  ;;  %s211_s24 = scalar_lea.vmem %s159_s1, 128  ;;  %p216_p9 = scmp.lt.s32.totalorder %s159_s1, %s159_s1 }
  0x18   :  { %p212_p8 = scmp.ne.s32.totalorder %s159_s1, %s211_s24  ;;  %p217_p10 = scmp.lt.s32.totalorder %s211_s24, %s211_s24 }
  0x19   :  { %v37_v5 = vmul.f32 %v167_v3, %v29_v2 }
  0x1a   :  { %p218_p11 = por %p217_p10, %p216_p9 }
  0x1b   :  { %v275_v6 = vadd.f32 %v168_v4, %v37_v5 }
  0x1c   :  { %p219_p12 = pnand %p218_p11, %p212_p8 }
  0x1d   :  { %v49_v7 = vand.u32 2139095040, %v275_v6  ;;  %v46_v9 = vand.u32 2147483647, %v275_v6  ;;  %vm48_vm7 = vcmp.lt.s32.totalorder %v275_v6, 0  ;;  %vm138_vm12 = vweird.f32 %v275_v6 }
  0x1f   :  { %v50_v8 = vshrl.u32 %v49_v7, 23  ;;  %v53_v12 = vand.u32 8388607, %v46_v9  ;;  %vm47_vm8 = vcmp.le.f32.partialorder %v46_v9, 0.7853982 }
  0x21   :  { %v169_v10 = vadd.s32 4294967169, %v50_v8  ;;  %v54_v15 = vor.u32 8388608, %v53_v12 }
  0x23   :  { %v56_v11 = vadd.s32 1, %v169_v10  ;;  %v94_v35 = vshll.u32 %v54_v15, 8 }
  0x25   :  { %vm57_vm0 = vcmp.gt.s32.totalorder %v56_v11, 0 }
  0x26   :  { %v58_v13 = vsel %vm57_vm0, %v56_v11, 0 }
  0x27   :  { %v60_v14 = vand.u32 31, %v58_v13  ;;  %v59_v16 = vshrl.u32 %v58_v13, 5 }
  0x29   :  { %v61_v17 = vsub.s32 32, %v60_v14  ;;  %v63_v19 = vshll.u32 %v238_v18, %v60_v14  ;;  %v66_v21 = vshll.u32 %v239_v20, %v60_v14  ;;  %v69_v23 = vshll.u32 %v240_v22, %v60_v14 }
  0x2a   :  { %v72_v25 = vshll.u32 %v241_v24, %v60_v14  ;;  %v75_v27 = vshll.u32 %v242_v26, %v60_v14  ;;  %vm78_vm1 = vcmp.lt.s32.totalorder %v59_v16, 1  ;;  %vm81_vm2 = vcmp.lt.s32.totalorder %v59_v16, 4 }
  0x2b   :  { %v62_v28 = vshrl.u32 %v238_v18, %v61_v17  ;;  %v64_v29 = vshrl.u32 %v239_v20, %v61_v17  ;;  %v67_v30 = vshrl.u32 %v240_v22, %v61_v17  ;;  %v70_v31 = vshrl.u32 %v241_v24, %v61_v17 }
  0x2c   :  { %v73_v32 = vshrl.u32 %v242_v26, %v61_v17  ;;  %v76_v34 = vshrl.u32 %v243_v33, %v61_v17  ;;  %vm79_vm3 = vcmp.lt.s32.totalorder %v59_v16, 2  ;;  %vm80_vm4 = vcmp.lt.s32.totalorder %v59_v16, 3 }
  0x2d   :  { %v65_v36 = vor.u32 %v64_v29, %v63_v19  ;;  %v68_v37 = vor.u32 %v67_v30, %v66_v21  ;;  %v71_v38 = vor.u32 %v70_v31, %v69_v23 }
  0x2e   :  { %v74_v39 = vor.u32 %v73_v32, %v72_v25  ;;  %v77_v40 = vor.u32 %v76_v34, %v75_v27 }
  0x2f   :  { %v82_v41 = vsel %vm78_vm1, %v62_v28, %v65_v36  ;;  %v83_v42 = vsel %vm81_vm2, %v71_v38, 2102212464  ;;  %v86_v43 = vsel %vm78_vm1, %v65_v36, %v68_v37  ;;  %v90_v44 = vsel %vm78_vm1, %v68_v37, %v71_v38 }
  0x30   :  { %v84_v45 = vsel %vm80_vm4, %v68_v37, %v83_v42  ;;  %v87_v46 = vsel %vm81_vm2, %v74_v39, 920167782  ;;  %v91_v47 = vsel %vm81_vm2, %v77_v40, 1326507024 }
  0x31   :  { %v88_v48 = vsel %vm80_vm4, %v71_v38, %v87_v46  ;;  %v92_v49 = vsel %vm80_vm4, %v74_v39, %v91_v47  ;;  %v85_v50 = vsel %vm79_vm3, %v82_v41, %v84_v45 }
  0x32   :  { %v89_v51 = vsel %vm79_vm3, %v86_v43, %v88_v48  ;;  %v93_v52 = vsel %vm79_vm3, %v90_v44, %v92_v49  ;;  %v101_v57 = vmul.u32 %v94_v35, %v85_v50 }
  0x33   :  { %v281_v53 = vmul.u32.u64.low %v94_v35, %v93_v52  ;;  %v282_v54 = vmul.u32.u64.high %v94_v35, %v93_v52, %v281_v53  ;;  %v284_v55 = vmul.u32.u64.low %v94_v35, %v89_v51  ;;  %v285_v56 = vmul.u32.u64.high %v94_v35, %v89_v51, %v284_v55 }
  0x35   :  { %vm103_vm5 = vc.u32 %v282_v54, %v284_v55  ;;  %v104_v58 = vadd.s32 1, %v285_v56  ;;  %v102_v5 = vadd.s32 %v284_v55, %v282_v54 }
  0x37   :  { %v105_v59 = vsel %vm103_vm5, %v104_v58, %v285_v56 }
  0x38   :  { %v106_v60 = vadd.s32 %v105_v59, %v101_v57 }
  0x3a   :  { %v107_v61 = vadd.s32 536870912, %v106_v60 }
  0x3c   :  { %v108_v62 = vshrl.u32 %v107_v61, 30 }
  0x3e   :  { %v109_v63 = vshll.u32 %v108_v62, 30  ;;  %v132_v19 = vsub.s32 4, %v108_v62 }
  0x40   :  { %v110_v0 = vsub.s32 %v106_v60, %v109_v63  ;;  %v133_v22 = vsel %vm48_vm7, %v132_v19, %v108_v62 }
  0x41   :  { %v135_v25 = vsel %vm47_vm8, 0, %v133_v22 }
  0x42   :  { %v112_v1 = vsub.s32 0, %v110_v0  ;;  %v139_v26 = vadd.s32 3, %v135_v25 }
  0x44   :  { %v170_v2 = vmin.u32 %v112_v1, %v110_v0  ;;  %v140_v27 = vand.u32 3, %v139_v26 }
  0x46   :  { %v114_v3 = vclz %v170_v2  ;;  %vm145_vm9 = vcmp.eq.s32.totalorder %v140_v27, 2  ;;  %vm142_vm10 = vcmp.eq.s32.totalorder %v140_v27, 0  ;;  %vm141_vm11 = vcmp.lt.s32.totalorder %v140_v27, 2 }
  0x48   :  { %v171_v4 = vadd.s32 4294967294, %v114_v3 }
  0x4a   :  { %vm172_vm6 = vcmp.lt.s32.totalorder %v171_v4, 0 }
  0x4b   :  { %v117_v7 = vsel %vm172_vm6, 0, %v171_v4 }
  0x4c   :  { %v118_v8 = vsub.s32 32, %v117_v7  ;;  %v119_v10 = vshll.u32 %v110_v0, %v117_v7  ;;  %v122_v11 = vsub.s32 4294967266, %v117_v7 }
  0x4e   :  { %v120_v12 = vshrl.u32 %v102_v5, %v118_v8  ;;  %v123_v13 = vadd.s32 127, %v122_v11 }
  0x50   :  { %v121_v14 = vor.u32 %v120_v12, %v119_v10  ;;  %v124_v15 = vshll.u32 %v123_v13, 23 }
  0x52   :  { %v125_v16 = vor.u32 4788187, %v124_v15  ;;  %v128_v17 = vcvt.s32.f32 %v121_v14 }
  0x54   :  { %v126_v18 = vand.u32 2147483647, %v125_v16 }
  0x56   :  { %v129_v20 = vmul.f32 %v128_v17, %v126_v18 }
  0x58   :  { %v130_v21 = vxor.u32 2147483648, %v129_v20 }
  0x5a   :  { %v131_v23 = vsel %vm48_vm7, %v130_v21, %v129_v20 }
  0x5b   :  { %v134_v24 = vsel %vm47_vm8, %v275_v6, %v131_v23 }
  0x5c   :  { %185 = vcosq.f32 %v134_v24 }
  0x5d   :  { %187 = vsinq.f32 %v134_v24 }
  0x66   :  { %v186_v28 = vpop.eup %185 }
  0x67   :  { %v188_v29 = vpop.eup %187  ;;  %v146_v30 = vxor.u32 2147483648, %v186_v28 }
  0x68   :  { %v143_v31 = vxor.u32 2147483648, %v188_v29 }
  0x69   :  { %v147_v9 = vsel %vm145_vm9, %v146_v30, %v188_v29 }
  0x6a   :  { %v144_v32 = vsel %vm142_vm10, %v186_v28, %v143_v31 }
  0x6b   :  { %v148_v33 = vsel %vm141_vm11, %v144_v32, %v147_v9 }
  0x6c   :  { %v149_v34 = vsel %vm138_vm12, nan, %v148_v33 }
  0x6d   :  { %151 = vst.msk [vmem:[#allocation5] sm:$0xff] %vm150_vm13, %v149_v34 }
  0x6e   :  { %222 = shalt.err (!%p219_p12)
}
  0x6f   :  { %s223_s27 = scalar_lea.hbm %s310_s2, 128 }
  0x70   :  { %p224_p13 = scmp.ne.s32.totalorder %s310_s2, %s223_s27  ;;  %p227_p0 = scmp.lt.u32.totalorder %s223_s27, %s310_s2 }
  0x72   :  { %p229_p1 = pnand %p227_p0, %p224_p13 }
  0x74   :  { %232 = shalt.err (!%p229_p1)
}
  0x75   :  { %161 = dma.vmem_to_hbm [thread:$0]  %s159_s1, 128, %s310_s2, [#allocation4]  }
  0x76   :  { %235 = dma.done.wait [#allocation4], 128  }
  0x77   :  { %236 = vsyncadd [#allocation4], 4294967168 }
  0x78   :  { %165 = vsyncpa [#allocation3], 1 }
  0x79   :  { %166 = vsyncpa [#allocation4], 1 }

</bundles_post_ra>
